<compile_context>
chip_gen: v5e
topology: v5e:2x2
jax: 0.10.0
libtpu: 0.0.40
codegen_flags: <defaults>
</compile_context>

<pallas_src>
import jax
import jax.numpy as jnp
from jax.experimental import pallas as pl
from jax.experimental.pallas import tpu as pltpu


def _round_up(x: int, m: int) -> int:
    return ((x + m - 1) // m) * m


def _vmem_capacity_bytes() -> int:
    try:
        return int(pltpu.get_tpu_info().vmem_capacity_bytes)
    except Exception:
        return 64 << 20  # conservative: v7x physical VMEM per TC


def _seq_tile_budget_bytes(vmem_cap: int) -> int:
    # Per pipeline buffer.  2 buffers + residents must stay well under VMEM:
    # 128 MiB (v5e/v6e) -> 16 MiB budget; 64 MiB (v7x) -> ~10 MiB budget.
    return max(4 << 20, min(16 << 20, vmem_cap // 6))


# --------------------------------------------------------------------------- #
# Phase 1: streaming partial sums over the sequence axis (lane-dense [S, B*D]) #
# --------------------------------------------------------------------------- #
def _make_partial_sum_kernel(seq_len: int, seq_tile: int,
                             steps_per_split: int, has_ragged: bool):
    def kernel(seq_ref, psum_ref):
        c = pl.program_id(0)          # split index  ("parallel")
        s = pl.program_id(1)          # step within the split ("arbitrary")

        @pl.when(s == 0)
        def _():
            psum_ref[...] = jnp.zeros_like(psum_ref)

        def accumulate(tile):
            ts, bd = tile.shape
            # Keep full sublane parallelism: fold rows into groups of 8 and add
            # them into the resident (8, B*D) partial-sum block.
            psum_ref[...] += tile.reshape(ts // 8, 8, bd).sum(axis=0)

        if not has_ragged:
            # Fully regular grid: unmasked steady state on every step.
            accumulate(seq_ref[...].astype(jnp.float32))
        else:
            tile_start = (c * steps_per_split + s) * seq_tile
            fully_valid = tile_start + seq_tile <= seq_len

            @pl.when(fully_valid)
            def _():
                accumulate(seq_ref[...].astype(jnp.float32))

            @pl.when(jnp.logical_not(fully_valid))
            def _():
                # Partial (or fully out-of-range, clamped) tile: zero padded rows.
                tile = seq_ref[...].astype(jnp.float32)
                row = jax.lax.broadcasted_iota(jnp.int32, tile.shape, 0)
                tile = jnp.where(row + tile_start < seq_len, tile, 0.0)
                accumulate(tile)

    return kernel


# --------------------------------------------------------------------------- #
# Phase 2: combine partials, normalize (torch broadcast quirk), linear + bias  #
# --------------------------------------------------------------------------- #
def _finalize_kernel(psum_ref, wt_ref, b_ref, out_ref):
    B, D = out_ref.shape
    s = jnp.sum(psum_ref[...], axis=0)                     # [B, D] f32 total sum

    mean = jnp.mean(s, axis=-1)                            # [B]
    centered = s - mean[:, None]
    var = jnp.sum(centered * centered, axis=-1) / (D - 1)  # unbiased, like torch.std
    inv_std = jax.lax.rsqrt(var)                           # EUP; replaces the divide

    # PyTorch's right-aligned broadcast of the [1, B] stats over [1, B, D]:
    # element (b, d) is normalized with the stats of row d (requires B == D).
    norm = (s - mean[None, :]) * inv_std[None, :]          # [B, D]

    out = jnp.dot(norm, wt_ref[...],
                  preferred_element_type=jnp.float32) + b_ref[...]
    out_ref[...] = out.astype(out_ref.dtype)               # activation = None


# --------------------------------------------------------------------------- #
# Wrapper                                                                      #
# --------------------------------------------------------------------------- #
def sum_norm_compressor(sequence: jax.Array, weight: jax.Array, bias: jax.Array,
                        *, seq_tile: int | None = None,
                        n_splits: int = 2) -> jax.Array:
    """sequence: [S, B, D], weight: [D, D] (nn.Linear weight), bias: [D].
    Returns [1, B, D], matching the PyTorch module."""
    S, B, D = sequence.shape
    assert weight.shape == (D, D) and bias.shape == (D,)
    # PyTorch's broadcast in `normalize` requires batch == item_size.
    assert B == D, "SumNormCompressor's normalize() broadcast requires batch_size == item_size"

    BD = B * D
    itemsize = jnp.dtype(sequence.dtype).itemsize
    seq2d = sequence.reshape(S, BD)        # lane-dense streaming layout (free reshape)

    vmem_cap = _vmem_capacity_bytes()
    budget = _seq_tile_budget_bytes(vmem_cap)

    if seq_tile is None:
        rows = budget // max(1, BD * itemsize)
        rows = max(8, (rows // 8) * 8)
        seq_tile = min(rows, _round_up(S, 8))
    else:
        seq_tile = min(max(8, _round_up(int(seq_tile), 8)), _round_up(S, 8))

    n_steps = pl.cdiv(S, seq_tile)                       # valid (possibly partial) blocks
    n_splits = max(1, min(int(n_splits), n_steps))       # split S across TCs (v7x: 2)
    steps_per_split = pl.cdiv(n_steps, n_splits)
    has_oob = steps_per_split * n_splits > n_steps
    has_ragged = has_oob or (S % seq_tile != 0)

    if has_oob:
        def seq_index_map(c, s):
            # Clamp to the last (possibly partial) block so the DMA stays in bounds;
            # the in-kernel mask zeroes its contribution.
            return (jnp.minimum(c * steps_per_split + s, n_steps - 1), 0)
    else:
        def seq_index_map(c, s):
            return (c * steps_per_split + s, 0)

    # Layout-aware VMEM budget (flattened tiles have no lane/sublane padding).
    tile_bytes = seq_tile * BD * itemsize
    psum_bytes = 8 * BD * 4
    vmem_bytes = 2 * tile_bytes + 2 * psum_bytes         # double-buffered in/out blocks
    vmem_limit = int(min(vmem_bytes + (2 << 20), (vmem_cap * 3) // 4))

    partials = pl.pallas_call(
        _make_partial_sum_kernel(S, seq_tile, steps_per_split, has_ragged),
        out_shape=jax.ShapeDtypeStruct((n_splits * 8, BD), jnp.float32),
        grid_spec=pltpu.PrefetchScalarGridSpec(
            num_scalar_prefetch=0,
            grid=(n_splits, steps_per_split),
            in_specs=[pl.BlockSpec((seq_tile, BD), seq_index_map)],
            out_specs=pl.BlockSpec((8, BD), lambda c, s: (c, 0)),
        ),
        compiler_params=pltpu.CompilerParams(
            dimension_semantics=("parallel", "arbitrary"),
            vmem_limit_bytes=vmem_limit,
        ),
        cost_estimate=pl.CostEstimate(
            flops=int(S * BD),
            transcendentals=0,
            bytes_accessed=int(S * BD * itemsize + n_splits * 8 * BD * 4),
        ),
    )(seq2d)

    # Tiny finalize kernel: combine partials, normalize, linear + bias.
    wt = weight.T                       # [D, D] so the kernel does a plain x @ W^T
    b2 = bias.reshape(1, D)
    psum3 = partials.reshape(n_splits * 8, B, D)
    w_itemsize = jnp.dtype(weight.dtype).itemsize
    b_itemsize = jnp.dtype(bias.dtype).itemsize

    out_2d = pl.pallas_call(
        _finalize_kernel,
        out_shape=jax.ShapeDtypeStruct((B, D), sequence.dtype),
        grid=(1,),
        in_specs=[
            pl.BlockSpec((n_splits * 8, B, D), lambda i: (0, 0, 0)),
            pl.BlockSpec((D, D), lambda i: (0, 0)),
            pl.BlockSpec((1, D), lambda i: (0, 0)),
        ],
        out_specs=pl.BlockSpec((B, D), lambda i: (0, 0)),
        compiler_params=pltpu.CompilerParams(
            dimension_semantics=("arbitrary",),
        ),
        cost_estimate=pl.CostEstimate(
            flops=int(n_splits * 8 * BD + 6 * BD + 2 * B * D * D + BD),
            transcendentals=int(B),
            bytes_accessed=int(n_splits * 8 * BD * 4 + D * D * w_itemsize
                               + D * b_itemsize + BD * itemsize),
        ),
    )(psum3, wt, b2)

    return out_2d[None]                 # [1, B, D] (keepdim of the sum)


def _reference(sequence, weight, bias):
    """Pure-JAX reference mirroring the PyTorch code line by line."""
    s = jnp.sum(sequence.astype(jnp.float32), axis=0, keepdims=True)   # [1, B, D]
    mean = jnp.mean(s, axis=-1)                                        # [1, B]
    std = jnp.std(s, axis=-1, ddof=1)                                  # [1, B] (torch default: unbiased)
    # emulate PyTorch's right-aligned broadcast of [1, B] against [1, B, D]
    norm = (s - mean[:, None, :]) / std[:, None, :]                    # [1, B, D]
    return (norm @ weight.T + bias).astype(sequence.dtype)


if __name__ == "__main__":
    key = jax.random.PRNGKey(0)
    k_seq1, k_seq2, k_seq3, k_w, k_b = jax.random.split(key, 5)

    B = D = 32   # batch == item_size, as required by the module's normalize() broadcast
    bound = 1.0 / (D ** 0.5)
    weight = jax.random.uniform(k_w, (D, D), minval=-bound, maxval=bound, dtype=jnp.float32)
    bias = jax.random.uniform(k_b, (D,), minval=-bound, maxval=bound, dtype=jnp.float32)

    # Case 1: regular grid (S divides evenly, 2 splits x 2 steps, no masking path).
    S1 = 32
    seq1 = jax.random.normal(k_seq1, (S1, B, D), dtype=jnp.float32)
    out1 = jax.block_until_ready(sum_norm_compressor(seq1, weight, bias, seq_tile=8))
    ref1 = _reference(seq1, weight, bias)
    assert out1.shape == (1, B, D)
    assert jnp.allclose(out1, ref1, atol=1e-4, rtol=1e-4), "mismatch (even tiles)"

    # Case 2: ragged tail + uneven split (exercises the gated mask and the
    # clamped out-of-range block index).
    S2 = 20
    seq2 = jax.random.normal(k_seq2, (S2, B, D), dtype=jnp.float32)
    out2 = jax.block_until_ready(sum_norm_compressor(seq2, weight, bias, seq_tile=8))
    ref2 = _reference(seq2, weight, bias)
    assert out2.shape == (1, B, D)
    assert jnp.allclose(out2, ref2, atol=1e-4, rtol=1e-4), "mismatch (ragged tiles)"

    # Case 3: automatic tile sizing (whole sequence fits one tile, single split).
    S3 = 40
    seq3 = jax.random.normal(k_seq3, (S3, B, D), dtype=jnp.float32)
    out3 = jax.block_until_ready(sum_norm_compressor(seq3, weight, bias))
    ref3 = _reference(seq3, weight, bias)
    assert out3.shape == (1, B, D)
    assert jnp.allclose(out3, ref3, atol=1e-4, rtol=1e-4), "mismatch (auto tile)"

    print("KERNEL_OK")
</pallas_src>

<mosaic_0001>
module attributes {stable_mosaic.version = 11 : i64} {
  func.func @kernel(%arg0: i32, %arg1: i32, %arg2: memref<8x1024xf32, #tpu.memory_space<vmem>>, %arg3: memref<8x1024xf32, #tpu.memory_space<vmem>>) attributes {dimension_semantics = [#tpu.dimension_semantics<parallel>, #tpu.dimension_semantics<arbitrary>], iteration_bounds = array<i64: 2, 2>, scalar_prefetch = 0 : i64, scratch_operands = 0 : i64, tpu.core_type = #tpu.core_type<tc>, window_params = [{transform_indices = @transform_0, window_bounds = array<i64: 8, 1024>}, {transform_indices = @transform_1, window_bounds = array<i64: 8, 1024>}]} {
    %c0_i32 = arith.constant 0 : i32
    %0 = arith.cmpi eq, %arg1, %c0_i32 : i32
    %1 = arith.extui %0 : i1 to i32
    %c0_i32_0 = arith.constant 0 : i32
    %2 = arith.cmpi ne, %1, %c0_i32_0 : i32
    scf.if %2 {
      %cst_6 = arith.constant 0.000000e+00 : f32
      %9 = vector.broadcast %cst_6 : f32 to vector<8x1024xf32>
      %c0_7 = arith.constant 0 : index
      %c0_8 = arith.constant 0 : index
      %10 = vector.load %arg3[%c0_7, %c0_8] : memref<8x1024xf32, #tpu.memory_space<vmem>>, vector<8x1024xf32>
      tpu.vector_store %arg3[%c0_7, %c0_8], %9 {strides = array<i32>} : memref<8x1024xf32, #tpu.memory_space<vmem>>, vector<8x1024xf32>,
    } else {
    }
    %c0 = arith.constant 0 : index
    %c0_1 = arith.constant 0 : index
    %3 = vector.load %arg2[%c0, %c0_1] : memref<8x1024xf32, #tpu.memory_space<vmem>>, vector<8x1024xf32>
    %c0_2 = arith.constant 0 : index
    %c0_3 = arith.constant 0 : index
    %4 = vector.load %arg3[%c0_2, %c0_3] : memref<8x1024xf32, #tpu.memory_space<vmem>>, vector<8x1024xf32>
    %5 = vector.shape_cast %3 : vector<8x1024xf32> to vector<1x8x1024xf32>
    %cst = arith.constant dense<0.000000e+00> : vector<8x1024xf32>
    %6 = vector.multi_reduction <add>, %5, %cst [0] : vector<1x8x1024xf32> to vector<8x1024xf32>
    %7 = arith.addf %4, %6 : vector<8x1024xf32>
    %c0_4 = arith.constant 0 : index
    %c0_5 = arith.constant 0 : index
    %8 = vector.load %arg3[%c0_4, %c0_5] : memref<8x1024xf32, #tpu.memory_space<vmem>>, vector<8x1024xf32>
    tpu.vector_store %arg3[%c0_4, %c0_5], %7 {strides = array<i32>} : memref<8x1024xf32, #tpu.memory_space<vmem>>, vector<8x1024xf32>,
    return
  }
  func.func @transform_0(%arg0: i32, %arg1: i32) -> (i32, i32) {
    %c2_i32 = arith.constant 2 : i32
    %0 = arith.muli %arg0, %c2_i32 : i32
    %1 = arith.addi %0, %arg1 : i32
    %c0_i32 = arith.constant 0 : i32
    %c0_i32_0 = arith.constant 0 : i32
    return %1, %c0_i32 : i32, i32
  }
  func.func @transform_1(%arg0: i32, %arg1: i32) -> (i32, i32) {
    %c0_i32 = arith.constant 0 : i32
    %c0_i32_0 = arith.constant 0 : i32
    return %arg0, %c0_i32 : i32, i32
  }
}

</mosaic_0001>

<bundles_post_ra>
// kernel: tpu_custom_call.1
= control target key start
LH: loop header
LB: loop body
LE: loop exit
PB: predicated region body
PF: predicated region fallthrough
CT: control target
= control target key end

     0   :  { %6 = vsyncpa [#allocation3], 0  ;;  %s810_s0 = inlined_call_operand.hbm [shape: f32[32,1024], index: 0, kind: input, shape index: {}]   ;;  %s811_s1 = inlined_call_operand.hbm [shape: f32[16,1024], index: 1, kind: output, shape index: {}]  }
   0x1   :  { %8 = vsyncpa [#allocation3 + $0x1], 0 }
   0x2   :  { %9 = vsyncpa [#allocation4], 0 }
   0x3   :  { %11 = vsyncpa [#allocation4 + $0x1], 0  ;;  %s596_s6 = smov 0   ;;  %s598_s7 = smov 0  }
   0x4   :  { %s600_s8 = smov 0   ;;  %s602_s9 = smov 0  }
   0x5   :  { %s604_s10 = smov 0   ;;  %s606_s11 = smov 0  }
   0x6   :  { %s608_s12 = smov 0   ;;  %s610_s13 = smov 0  }
   0x7   :  { %s612_s14 = smov 0   ;;  %s614_s15 = smov 0  }
   0x8   :  { %s616_s16 = smov 0  }
   0x9 LB: > { %s307_s17 = sadd.s32 4294967295, %s583_s16   ;;  %s308_s18 = sadd.s32 4294967294, %s583_s16   ;;  %s583_s16 = sphi %s616_s16, %s17_s16   ;;  %s579_s15 = sphi %s614_s15, %s831_s15   ;;  %s575_s14 = sphi %s612_s14, %s830_s14   ;;  %s571_s13 = sphi %s610_s13, %s829_s13   ;;  %s567_s12 = sphi %s608_s12, %s828_s12   ;;  %s563_s11 = sphi %s606_s11, %s827_s11   ;;  %s559_s10 = sphi %s604_s10, %s826_s10   ;;  %s555_s9 = sphi %s602_s9, %s825_s9   ;;  %s551_s8 = sphi %s600_s8, %s824_s8   ;;  %s547_s7 = sphi %s598_s7, %s823_s7   ;;  %s543_s6 = sphi %s596_s6, %s822_s6  }
   0xa   : > { %s26_s19 = sadd.s32 1, %s575_s14  ;;  %s29_s20 = sadd.s32 1, %s579_s15 }
   0xb   : > { %p27_p0 = scmp.ge.s32.totalorder %s26_s19, 2  ;;  %s309_s21 = sshll.u32 %s579_s15, 1 }
   0xc   : > { %s655_s22 = sadd.s32 %s575_s14, %s309_s21  ;;  %s40_s23 = sadd.s32 1, %s563_s11 }
   0xd   : > { %s833_s19 = smov (%p27_p0, %s26_s19), 0  ;;  %s835_s20 = smov (!%p27_p0, %s29_s20), %s579_s15 }
   0xe   : > { %814 = sst [smem:[#allocation8_spill]] %s833_s19  ;;  %p47_p1 = scmp.ne.s32.totalorder %s563_s11, %s559_s10 }
   0xf   : > { %p48_p2 = scmp.eq.s32.totalorder %s583_s16, 0  ;;  %p31_p3 = scmp.ge.s32.totalorder %s835_s20, 2 }
  0x10   : > { %p53_p4 = scmp.ne.s32.totalorder %s559_s10, %s555_s9  ;;  %p54_p6 = scmp.eq.s32.totalorder %s307_s17, 0 }
  0x11   : > { %p665_p5 = por %p48_p2, %p47_p1  ;;  %s837_s20 = smov (%p31_p3, %s835_s20), 0 }
  0x12   : > { %816 = sst [smem:[#allocation9_spill]] %s837_s20  ;;  %p671_p7 = por %p54_p6, %p53_p4 }
  0x13   : > { %s66_s26 = sadd.s32 1, %s551_s8  ;;  %s310_s27 = sshll.u32 %s837_s20, 1 }
  0x14   : > { %s63_s28 = ssub.s32 %s579_s15, %s837_s20  ;;  %s36_s29 = sadd.s32 %s310_s27, %s833_s19 }
  0x15   : > { %p64_p8 = scmp.eq.s32.totalorder %s63_s28, 0  ;;  %s37_s30 = ssub.s32 %s655_s22, %s36_s29 }
  0x16   : > { %p76_p9 = scmp.ne.s32.totalorder %s551_s8, %s547_s7  ;;  %p38_p10 = scmp.eq.s32.totalorder %s37_s30, 0 }
  0x17   : > { %p77_p11 = scmp.eq.s32.totalorder %s307_s17, 3  ;;  %p82_p13 = scmp.ne.s32.totalorder %s547_s7, %s543_s6 }
  0x18   : > { %s684_s2 = scalar_select %p64_p8, %s551_s8, %s66_s26  }
  0x19   : > { %s687_s3 = scalar_select %p38_p10, %s563_s11, %s40_s23  }
  0x1a   : > { %p689_p12 = por %p77_p11, %p76_p9  ;;  %p83_p0 = scmp.eq.s32.totalorder %s308_s18, 3 }
  0x1b   : > { %p340_p1 = scmp.lt.s32.totalorder %s583_s16, 4  ;;  %s103_s5 = sand.u32 1, %s563_s11  }
  0x1c   : > { %p699_p2 = por %p83_p0, %p82_p13  ;;  %s313_s17 = sshll.u32 %s103_s5, 6 }
  0x1d   : > { %s326_s21 = sshll.u32 %s655_s22, 6  ;;  %s107_s29 = scalar_lea.vmem [#allocation2], %s313_s17 }
  0x1e   : > { %s114_s27 = scalar_lea.hbm %s810_s0, %s326_s21  ;;  %s118_s30 = sshll.u32 %s107_s29, 4  ;;  %s119_s30 = int_to_ptr.vmem [resolvable:$true] %s118_s30 }
  0x1f   : > { %s116_s28 = sshll.u32 %s114_s27, 4  ;;  %p333_p3 = pnand %p340_p1, %p665_p5  ;;  %s117_s28 = int_to_ptr.hbm [resolvable:$true] %s116_s28 }
  0x20   : > { %p317_p4 = scmp.ge.s32.totalorder %s583_s16, 1  ;;  %p123_p6 = scmp.lt.s32.totalorder %s583_s16, 5 }
  0x21   : > { %s104_s18 = scalar_lea.sflag [#allocation3], %s103_s5 }
  0x22   : > { %335 = dma.hbm_to_vmem [thread:$0]  (!%p333_p3), %s117_s28, 1024, %s119_s30, %s104_s18  }
  0x23   : > { %p124_p8 = pnand %p317_p4, %p123_p6 }
  0x24   : > { %s129_s22 = sand.u32 (!%p124_p8), 1, %s559_s10  }
  0x25   : > { %127 = sbr.rel (%p124_p8) target bundleno = 74 (0x4a), region = 24  ;;  %s318_s20 = sshll.u32 (!%p124_p8), %s129_s22, 6 }
  0x26   : > { %s130_s19 = scalar_lea.sflag (!%p124_p8), [#allocation3], %s129_s22  ;;  %s712_s26 = scalar_lea.vmem (!%p124_p8), [#allocation2], %s318_s20 }
  0x2a   : > { %534 = dma.done.wait (%p671_p7), %s130_s19, 1024  }
  0x2b   : > { %536 = vsyncadd (%p671_p7), %s130_s19, 4294966272  ;;  %s150_s24 = sand.u32 1, %s547_s7   ;;  %p320_p5 = scmp.ne.s32.totalorder %s567_s12, 0 }
  0x2c   : > { %s319_s5 = sshll.u32 %s150_s24, 6 }
  0x2d   : > { %s721_s17 = scalar_lea.vmem [#allocation5], %s319_s5  ;;  %158 = sbr.rel (%p320_p5) target bundleno = 59 (0x3b), region = 32 }
  0x32   : > { %v585_v0 = vmov 0.0  }
  0x33   : > { %159 = vst [vmem:[%s721_s17] sm:$0xff] %v585_v0 }
  0x34   : > { %160 = vst [vmem:[%s721_s17 + $0x8] sm:$0xff] %v585_v0 }
  0x35   : > { %161 = vst [vmem:[%s721_s17 + $0x10] sm:$0xff] %v585_v0 }
  0x36   : > { %162 = vst [vmem:[%s721_s17 + $0x18] sm:$0xff] %v585_v0 }
  0x37   : > { %163 = vst [vmem:[%s721_s17 + $0x20] sm:$0xff] %v585_v0 }
  0x38   : > { %164 = vst [vmem:[%s721_s17 + $0x28] sm:$0xff] %v585_v0 }
  0x39   : > { %165 = vst [vmem:[%s721_s17 + $0x30] sm:$0xff] %v585_v0 }
  0x3a   : > { %166 = vst [vmem:[%s721_s17 + $0x38] sm:$0xff] %v585_v0 }
  0x3b PF: > { %v167_v1 = vld [vmem:[%s712_s26] sm:$0xff]  ;;  %v168_v3 = vld [vmem:[%s712_s26 + $0x8] sm:$0xff]  ;;  %s327_s12 = sshll.u32 %s571_s13, 6  ;;  %v169_v6 = vld [vmem:[%s712_s26 + $0x10] sm:$0xff]  ;;  %s221_s25 = sshll.u32 %s721_s17, 4  ;;  %s222_s25 = int_to_ptr.vmem [resolvable:$true] %s221_s25 }
  0x3c   : > { %v175_v2 = vld [vmem:[%s721_s17] sm:$0xff]  ;;  %v176_v5 = vld [vmem:[%s721_s17 + $0x8] sm:$0xff]  ;;  %v177_v7 = vld [vmem:[%s721_s17 + $0x10] sm:$0xff]  ;;  %s219_s13 = scalar_lea.hbm %s811_s1, %s327_s12  ;;  %s208_s23 = scalar_lea.sflag [#allocation4], %s150_s24 }
  0x3d   : > { %v191_v4 = vadd.f32 %v175_v2, %v167_v1  ;;  %v192_v8 = vadd.f32 %v176_v5, %v168_v3  ;;  %v193_v9 = vadd.f32 %v177_v7, %v169_v6  ;;  %v170_v10 = vld [vmem:[%s712_s26 + $0x18] sm:$0xff]  ;;  %v171_v12 = vld [vmem:[%s712_s26 + $0x20] sm:$0xff]  ;;  %v172_v15 = vld [vmem:[%s712_s26 + $0x28] sm:$0xff]  ;;  %s223_s21 = sshll.u32 %s219_s13, 4  ;;  %s481_s18 = scalar_lea.hbm %s811_s1, 128  ;;  %s224_s21 = int_to_ptr.hbm [resolvable:$true] %s223_s21 }
  0x3e   : > { %v178_v11 = vld [vmem:[%s721_s17 + $0x18] sm:$0xff]  ;;  %v179_v14 = vld [vmem:[%s721_s17 + $0x20] sm:$0xff]  ;;  %v173_v19 = vld [vmem:[%s712_s26 + $0x30] sm:$0xff]  ;;  %s475_s27 = sshra.s32 %s224_s21, 4  ;;  %s476_s27 = int_to_ptr.hbm [resolvable:$true] %s475_s27 }
  0x3f   : > { %199 = vst [vmem:[%s721_s17] sm:$0xff] %v191_v4  ;;  %v194_v13 = vadd.f32 %v178_v11, %v170_v10  ;;  %v180_v16 = vld [vmem:[%s721_s17 + $0x28] sm:$0xff]  ;;  %v195_v17 = vadd.f32 %v179_v14, %v171_v12  ;;  %v174_v21 = vld [vmem:[%s712_s26 + $0x38] sm:$0xff]  ;;  %s477_s28 = scalar_lea.hbm %s476_s27, 64  ;;  %p482_p11 = scmp.lt.s32.totalorder %s476_s27, %s811_s1 }
  0x40   : > { %200 = vst [vmem:[%s721_s17 + $0x8] sm:$0xff] %v192_v8  ;;  %v196_v18 = vadd.f32 %v180_v16, %v172_v15  ;;  %v181_v20 = vld [vmem:[%s721_s17 + $0x30] sm:$0xff]  ;;  %p478_p7 = scmp.ne.s32.totalorder %s476_s27, %s477_s28  ;;  %p483_p13 = scmp.lt.s32.totalorder %s481_s18, %s477_s28 }
  0x41   : > { %201 = vst [vmem:[%s721_s17 + $0x10] sm:$0xff] %v193_v9  ;;  %v197_v22 = vadd.f32 %v181_v20, %v173_v19  ;;  %v182_v23 = vld [vmem:[%s721_s17 + $0x38] sm:$0xff] }
  0x42   : > { %202 = vst [vmem:[%s721_s17 + $0x18] sm:$0xff] %v194_v13  ;;  %v198_v24 = vadd.f32 %v182_v23, %v174_v21  ;;  %p479_p9 = pnand %p478_p7, %p689_p12  ;;  %p484_p0 = por %p483_p13, %p482_p11 }
  0x43   : > { %203 = vst [vmem:[%s721_s17 + $0x20] sm:$0xff] %v195_v17 }
  0x44   : > { %204 = vst [vmem:[%s721_s17 + $0x28] sm:$0xff] %v196_v18  ;;  %p480_p10 = pneg %p479_p9 }
  0x45   : > { %205 = vst [vmem:[%s721_s17 + $0x30] sm:$0xff] %v197_v22 }
  0x46   : > { %206 = vst [vmem:[%s721_s17 + $0x38] sm:$0xff] %v198_v24  ;;  %p485_p1 = pnand %p484_p0, %p480_p10 }
  0x48   : > { %488 = shalt.err (!%p485_p1)
}
  0x49   : > { %330 = dma.vmem_to_hbm [thread:$0]  (%p689_p12), %s222_s25, 1024, %s224_s21, %s208_s23  }
  0x4a PF: > { %p341_p3 = scmp.ge.s32.totalorder %s583_s16, 2  ;;  %s235_s24 = sand.u32 1, %s543_s6  }
  0x4b   : > { %s236_s5 = scalar_lea.sflag [#allocation4], %s235_s24 }
  0x4c   : > { %p337_p4 = pnand %p341_p3, %p699_p2 }
  0x4e   : > { %p338_p6 = pneg %p337_p4 }
  0x50   : > { %538 = dma.done.wait (%p338_p6), %s236_s5, 1024  }
  0x51   : > { %540 = vsyncadd (%p338_p6), %s236_s5, 4294966272  ;;  %s17_s16 = sadd.s32 1, %s583_s16   ;;  %s820_s4 = sld [smem:[#allocation8_spill]] }
  0x52   : > { %p14_p8 = scmp.ge.s32.totalorder %s17_s16, 6   ;;  %s821_s17 = sld [smem:[#allocation9_spill]] }
  0x53   : > { %s822_s6 = smov %s547_s7  ;;  %s823_s7 = smov %s551_s8 }
  0x54   : > { %s824_s8 = smov %s684_s2  ;;  %s825_s9 = smov %s559_s10 }
  0x55   : > { %s826_s10 = smov %s563_s11  ;;  %s827_s11 = smov %s687_s3 }
  0x56   : > { %s828_s12 = smov %s575_s14  ;;  %s829_s13 = smov %s579_s15 }
  0x57   : > { %s830_s14 = smov %s820_s4  ;;  %16 = sbr.rel (!%p14_p8) target bundleno = 9 (0x9), region = 73 }
  0x58   : > { %s831_s15 = smov %s821_s17 }
  0x5c   :  { %242 = vsyncpa [#allocation3], 1 }
  0x5d   :  { %244 = vsyncpa [#allocation3 + $0x1], 1 }
  0x5e   :  { %245 = vsyncpa [#allocation4], 1 }
  0x5f   :  { %247 = vsyncpa [#allocation4 + $0x1], 1 }

</bundles_post_ra>
